<compile_context>
chip_gen: v5e
topology: v5e:2x2
jax: 0.10.0
libtpu: 0.0.40
codegen_flags: <defaults>
</compile_context>

<pallas_src>
import functools

import jax
import jax.numpy as jnp
from jax.experimental import pallas as pl
from jax.experimental.pallas import tpu as pltpu

_LANE = 128  # TPU lane width


def _round_up(v: int, m: int) -> int:
    return ((v + m - 1) // m) * m


def _make_kernel(num_mlp_layers: int, shape_dim: int):
    """Fused MLP + final layer + in-place quaternion normalization."""

    def kernel(*refs):
        # refs layout:
        #   x_ref, (w_i, b_i) * num_mlp_layers, w_final, b_final, out_ref
        x_ref = refs[0]
        out_ref = refs[-1]

        h = x_ref[...]                       # bf16, fed straight to the MXU
        idx = 1
        for _ in range(num_mlp_layers):
            w = refs[idx][...]               # bf16 (pre-cast in the wrapper)
            b = refs[idx + 1][...]           # f32 (1, H) -> broadcasts over rows
            idx += 2
            # MXU in bf16 with f32 accumulation; bias add + ReLU in f32, then
            # immediately downcast so the carried activation is bf16.
            h = jnp.dot(h, w, preferred_element_type=jnp.float32) + b
            h = jnp.maximum(h, 0.0).astype(jnp.bfloat16)

        wf = refs[idx][...]
        bf = refs[idx + 1][...]
        out = jnp.dot(h, wf, preferred_element_type=jnp.float32) + bf   # (TB, out_pad) f32

        # Normalize quaternion columns [shape_dim+4, shape_dim+8): one select
        # to isolate them, XLU row-sum, EUP rsqrt, then one select + one mul.
        col = jax.lax.broadcasted_iota(jnp.int32, out.shape, 1)
        is_quat = (col >= shape_dim + 4) & (col < shape_dim + 8)
        quat_only = jnp.where(is_quat, out, 0.0)
        ssq = jnp.sum(quat_only * quat_only, axis=1, keepdims=True)
        inv_norm = jax.lax.rsqrt(ssq + 1e-12)   # EUP; eps avoids NaN on zero rows
        out_ref[...] = (out * jnp.where(is_quat, inv_norm, 1.0)).astype(out_ref.dtype)

    return kernel


def init_params(key, in_size, mlp_out_sizes, shape_dimension):
    """PyTorch-Linear-style init: U(-1/sqrt(fan_in), 1/sqrt(fan_in))."""
    params = []
    prev = in_size
    for out_size in mlp_out_sizes:
        key, kw, kb = jax.random.split(key, 3)
        bound = 1.0 / jnp.sqrt(prev)
        w = jax.random.uniform(kw, (prev, out_size), jnp.float32, -bound, bound)
        b = jax.random.uniform(kb, (out_size,), jnp.float32, -bound, bound)
        params.append((w, b))
        prev = out_size
    # final layer: mlp_out_sizes[-1] -> shape_dimension + 8  (quaternion repr)
    key, kw, kb = jax.random.split(key, 3)
    bound = 1.0 / jnp.sqrt(prev)
    wf = jax.random.uniform(kw, (prev, shape_dimension + 8), jnp.float32, -bound, bound)
    bf = jax.random.uniform(kb, (shape_dimension + 8,), jnp.float32, -bound, bound)
    return params, (wf, bf)


def sdf_pose_head_forward(x, params, shape_dimension, *, block_rows=1024):
    """Forward pass. Returns (shape, position, scale, orientation_quaternion)."""
    mlp_params, (wf, bf) = params
    num_layers = len(mlp_params)

    N, F = x.shape
    out_dim = wf.shape[1]                        # shape_dim + 8
    out_pad = _round_up(out_dim, _LANE)          # lane-dense output width

    # ---- one-time parameter prep: bf16 weights, lane-dense padded widths ----
    prepped = []
    prev_real, prev_pad = F, F                   # keep F unpadded: x stream stays minimal
    for w, b in mlp_params:
        h_real = w.shape[1]
        h_pad = _round_up(h_real, _LANE)
        w_p = jnp.pad(w, ((0, prev_pad - prev_real), (0, h_pad - h_real)))
        b_p = jnp.pad(b, (0, h_pad - h_real))
        prepped.append((w_p.astype(jnp.bfloat16), b_p.reshape(1, -1)))  # bias stays f32
        prev_real, prev_pad = h_real, h_pad
    wf_p = jnp.pad(wf, ((0, prev_pad - prev_real),
                        (0, out_pad - out_dim))).astype(jnp.bfloat16)
    bf_p = jnp.pad(bf, (0, out_pad - out_dim)).reshape(1, -1)

    x_bf = x.astype(jnp.bfloat16)                # bf16 input stream (no-op if already bf16)

    # ---- batch tile from a VMEM budget that is safe on v7x (64 MiB) ----
    weight_bytes = 2 * sum(int(w.size) * 2 + int(b.size) * 4 for w, b in prepped)
    weight_bytes += 2 * (int(wf_p.size) * 2 + int(bf_p.size) * 4)   # double-buffered residents
    per_row_bytes = 2 * (F * 2 + out_pad * 2)    # double-buffered bf16 x / out tiles
    budget = 40 * 1024 * 1024
    tb_cap = max(16, (budget - weight_bytes) // per_row_bytes)

    if N <= 128:
        TB = N                                   # tiny batch: single step, no split overhead
    else:
        half = _round_up(pl.cdiv(N, 2), 16)      # >=2 grid steps so both v7x TCs get work
        TB = int(min(block_rows, tb_cap, half))
        TB = max(16, (TB // 16) * 16)            # bf16/f32-friendly sublane multiple
    grid = (pl.cdiv(N, TB),)

    inputs = [x_bf]
    in_specs = [pl.BlockSpec((TB, F), lambda i: (i, 0))]
    for w_p, b_p in prepped:
        inputs += [w_p, b_p]
        in_specs += [
            pl.BlockSpec(w_p.shape, lambda i: (0, 0)),       # VMEM-resident
            pl.BlockSpec(b_p.shape, lambda i: (0, 0)),
        ]
    inputs += [wf_p, bf_p]
    in_specs += [
        pl.BlockSpec(wf_p.shape, lambda i: (0, 0)),
        pl.BlockSpec(bf_p.shape, lambda i: (0, 0)),
    ]

    # Advisory cost estimate (padded shapes, bf16 I/O).
    flops = 0
    prev = F
    for w_p, _ in prepped:
        flops += 2 * N * prev * w_p.shape[1]
        prev = w_p.shape[1]
    flops += 2 * N * prev * out_pad
    bytes_accessed = (
        int(x_bf.size) * 2
        + sum(int(w.size) * 2 + int(b.size) * 4 for w, b in prepped)
        + int(wf_p.size) * 2 + int(bf_p.size) * 4
        + N * out_pad * 2
    )

    # vmem limit derived from actual footprint + Mosaic headroom, capped so it
    # is portable to v7x (64 MiB physical VMEM).
    vmem_limit = int(min(48 * 1024 * 1024,
                         max(16 * 1024 * 1024,
                             weight_bytes + TB * per_row_bytes + 4 * 1024 * 1024)))

    kernel = _make_kernel(num_layers, shape_dimension)

    out = pl.pallas_call(
        kernel,
        out_shape=jax.ShapeDtypeStruct((N, out_pad), jnp.bfloat16),
        grid=grid,
        in_specs=in_specs,
        out_specs=pl.BlockSpec((TB, out_pad), lambda i: (i, 0)),
        compiler_params=pltpu.CompilerParams(
            dimension_semantics=("parallel",),
            vmem_limit_bytes=vmem_limit,
        ),
        cost_estimate=pl.CostEstimate(
            flops=flops, transcendentals=N, bytes_accessed=bytes_accessed
        ),
    )(*inputs)

    # Slices returned as f32 for interface parity (values carry the bf16
    # rounding of the output slab — documented precision trade).
    shape_vec = out[:, :shape_dimension].astype(jnp.float32)
    position = out[:, shape_dimension:shape_dimension + 3].astype(jnp.float32)
    scale = out[:, shape_dimension + 3].astype(jnp.float32)
    orientation = out[:, shape_dimension + 4:shape_dimension + 8].astype(jnp.float32)
    return shape_vec, position, scale, orientation


if __name__ == "__main__":
    # Small, TPU-friendly shapes. (At this size the kernel is pure launch
    # overhead; the tiling/pipelining pays off for large batches.)
    batch = 8
    in_size = 32
    mlp_out_sizes = [64, 64]
    shape_dimension = 8

    key = jax.random.PRNGKey(0)
    key_x, key_p = jax.random.split(key)
    x = jax.random.normal(key_x, (batch, in_size), jnp.float32)
    params = init_params(key_p, in_size, mlp_out_sizes, shape_dimension)

    fwd = jax.jit(functools.partial(sdf_pose_head_forward,
                                    shape_dimension=shape_dimension))
    shape_vec, position, scale, orientation = fwd(x, params)
    jax.block_until_ready((shape_vec, position, scale, orientation))

    assert shape_vec.shape == (batch, shape_dimension)
    assert position.shape == (batch, 3)
    assert scale.shape == (batch,)
    assert orientation.shape == (batch, 4)

    # quaternion rows should be unit-norm (bf16 output slab -> loose tolerance)
    norms = jnp.sqrt(jnp.sum(orientation ** 2, axis=1))
    assert jnp.allclose(norms, 1.0, atol=1e-2), norms

    # Cross-check against a plain-JAX f32 reference of the same math
    # (bf16 MXU inputs + bf16 output storage keep this within a loose tolerance).
    h_ref = x
    for w, b in params[0]:
        h_ref = jnp.maximum(h_ref @ w + b, 0.0)
    ref = h_ref @ params[1][0] + params[1][1]
    q_ref = ref[:, shape_dimension + 4:shape_dimension + 8]
    q_ref = q_ref / jnp.sqrt(jnp.sum(q_ref ** 2, axis=1, keepdims=True))
    assert jnp.allclose(shape_vec, ref[:, :shape_dimension], atol=5e-2)
    assert jnp.allclose(position, ref[:, shape_dimension:shape_dimension + 3], atol=5e-2)
    assert jnp.allclose(scale, ref[:, shape_dimension + 3], atol=5e-2)
    assert jnp.allclose(orientation, q_ref, atol=5e-2)

    print("KERNEL_OK")
</pallas_src>

<mosaic_0001>
module attributes {stable_mosaic.version = 11 : i64} {
  func.func @kernel(%arg0: i32, %arg1: memref<8x32xbf16, #tpu.memory_space<vmem>>, %arg2: memref<32x128xbf16, #tpu.memory_space<vmem>>, %arg3: memref<1x128xf32, #tpu.memory_space<vmem>>, %arg4: memref<128x128xbf16, #tpu.memory_space<vmem>>, %arg5: memref<1x128xf32, #tpu.memory_space<vmem>>, %arg6: memref<128x128xbf16, #tpu.memory_space<vmem>>, %arg7: memref<1x128xf32, #tpu.memory_space<vmem>>, %arg8: memref<8x128xbf16, #tpu.memory_space<vmem>>) attributes {dimension_semantics = [#tpu.dimension_semantics<parallel>], iteration_bounds = array<i64: 1>, scalar_prefetch = 0 : i64, scratch_operands = 0 : i64, tpu.core_type = #tpu.core_type<tc>, window_params = [{transform_indices = @transform_0, window_bounds = array<i64: 8, 32>}, {pipeline_mode = #tpu.pipeline_mode<synchronous>, transform_indices = @transform_1, window_bounds = array<i64: 32, 128>}, {pipeline_mode = #tpu.pipeline_mode<synchronous>, transform_indices = @transform_2, window_bounds = array<i64: 1, 128>}, {pipeline_mode = #tpu.pipeline_mode<synchronous>, transform_indices = @transform_3, window_bounds = array<i64: 128, 128>}, {pipeline_mode = #tpu.pipeline_mode<synchronous>, transform_indices = @transform_4, window_bounds = array<i64: 1, 128>}, {pipeline_mode = #tpu.pipeline_mode<synchronous>, transform_indices = @transform_5, window_bounds = array<i64: 128, 128>}, {pipeline_mode = #tpu.pipeline_mode<synchronous>, transform_indices = @transform_6, window_bounds = array<i64: 1, 128>}, {transform_indices = @transform_7, window_bounds = array<i64: 8, 128>}]} {
    %c0 = arith.constant 0 : index
    %c0_0 = arith.constant 0 : index
    %0 = vector.load %arg1[%c0, %c0_0] : memref<8x32xbf16, #tpu.memory_space<vmem>>, vector<8x32xbf16>
    %c0_1 = arith.constant 0 : index
    %c0_2 = arith.constant 0 : index
    %1 = vector.load %arg2[%c0_1, %c0_2] : memref<32x128xbf16, #tpu.memory_space<vmem>>, vector<32x128xbf16>
    %c0_3 = arith.constant 0 : index
    %c0_4 = arith.constant 0 : index
    %2 = vector.load %arg3[%c0_3, %c0_4] : memref<1x128xf32, #tpu.memory_space<vmem>>, vector<1x128xf32>
    %cst = arith.constant dense<0.000000e+00> : vector<8x128xf32>
    %3 = tpu.matmul %0, %1, %cst {dimension_numbers = #tpu.dot_dimension_numbers<[1], [0], [0], [1], [0, 0, 1, 1], [], []>} : vector<8x32xbf16>, vector<32x128xbf16>, vector<8x128xf32> -> vector<8x128xf32>
    %4 = vector.broadcast %2 : vector<1x128xf32> to vector<8x128xf32>
    %5 = arith.addf %3, %4 : vector<8x128xf32>
    %cst_5 = arith.constant 0.000000e+00 : f32
    %6 = vector.broadcast %cst_5 : f32 to vector<8x128xf32>
    %7 = arith.maximumf %5, %6 : vector<8x128xf32>
    %8 = arith.truncf %7 : vector<8x128xf32> to vector<8x128xbf16>
    %c0_6 = arith.constant 0 : index
    %c0_7 = arith.constant 0 : index
    %9 = vector.load %arg4[%c0_6, %c0_7] : memref<128x128xbf16, #tpu.memory_space<vmem>>, vector<128x128xbf16>
    %c0_8 = arith.constant 0 : index
    %c0_9 = arith.constant 0 : index
    %10 = vector.load %arg5[%c0_8, %c0_9] : memref<1x128xf32, #tpu.memory_space<vmem>>, vector<1x128xf32>
    %cst_10 = arith.constant dense<0.000000e+00> : vector<8x128xf32>
    %11 = tpu.matmul %8, %9, %cst_10 {dimension_numbers = #tpu.dot_dimension_numbers<[1], [0], [0], [1], [0, 0, 1, 1], [], []>} : vector<8x128xbf16>, vector<128x128xbf16>, vector<8x128xf32> -> vector<8x128xf32>
    %12 = vector.broadcast %10 : vector<1x128xf32> to vector<8x128xf32>
    %13 = arith.addf %11, %12 : vector<8x128xf32>
    %cst_11 = arith.constant 0.000000e+00 : f32
    %14 = vector.broadcast %cst_11 : f32 to vector<8x128xf32>
    %15 = arith.maximumf %13, %14 : vector<8x128xf32>
    %16 = arith.truncf %15 : vector<8x128xf32> to vector<8x128xbf16>
    %c0_12 = arith.constant 0 : index
    %c0_13 = arith.constant 0 : index
    %17 = vector.load %arg6[%c0_12, %c0_13] : memref<128x128xbf16, #tpu.memory_space<vmem>>, vector<128x128xbf16>
    %c0_14 = arith.constant 0 : index
    %c0_15 = arith.constant 0 : index
    %18 = vector.load %arg7[%c0_14, %c0_15] : memref<1x128xf32, #tpu.memory_space<vmem>>, vector<1x128xf32>
    %cst_16 = arith.constant dense<0.000000e+00> : vector<8x128xf32>
    %19 = tpu.matmul %16, %17, %cst_16 {dimension_numbers = #tpu.dot_dimension_numbers<[1], [0], [0], [1], [0, 0, 1, 1], [], []>} : vector<8x128xbf16>, vector<128x128xbf16>, vector<8x128xf32> -> vector<8x128xf32>
    %20 = vector.broadcast %18 : vector<1x128xf32> to vector<8x128xf32>
    %21 = arith.addf %19, %20 : vector<8x128xf32>
    %22 = tpu.iota {dimensions = array<i32: 1>} : vector<8x128xi32>
    %c12_i32 = arith.constant 12 : i32
    %23 = vector.broadcast %c12_i32 : i32 to vector<8x128xi32>
    %24 = arith.cmpi sge, %22, %23 : vector<8x128xi32>
    %c16_i32 = arith.constant 16 : i32
    %25 = vector.broadcast %c16_i32 : i32 to vector<8x128xi32>
    %26 = arith.cmpi slt, %22, %25 : vector<8x128xi32>
    %27 = arith.andi %24, %26 : vector<8x128xi1>
    %cst_17 = arith.constant 0.000000e+00 : f32
    %28 = vector.broadcast %cst_17 : f32 to vector<8x128xf32>
    %29 = arith.select %27, %21, %28 : vector<8x128xi1>, vector<8x128xf32>
    %30 = arith.mulf %29, %29 : vector<8x128xf32>
    %cst_18 = arith.constant dense<0.000000e+00> : vector<8xf32>
    %31 = vector.multi_reduction <add>, %30, %cst_18 [1] : vector<8x128xf32> to vector<8xf32>
    %32 = vector.shape_cast %31 : vector<8xf32> to vector<8x1xf32>
    %cst_19 = arith.constant 9.99999996E-13 : f32
    %33 = vector.broadcast %cst_19 : f32 to vector<8x1xf32>
    %34 = arith.addf %32, %33 : vector<8x1xf32>
    %35 = math.rsqrt %34 : vector<8x1xf32>
    %cst_20 = arith.constant 1.000000e+00 : f32
    %36 = vector.shape_cast %35 : vector<8x1xf32> to vector<8x1xf32>
    %37 = vector.broadcast %36 : vector<8x1xf32> to vector<8x128xf32>
    %38 = vector.broadcast %cst_20 : f32 to vector<8x128xf32>
    %39 = arith.select %27, %37, %38 : vector<8x128xi1>, vector<8x128xf32>
    %40 = arith.mulf %21, %39 : vector<8x128xf32>
    %41 = arith.truncf %40 : vector<8x128xf32> to vector<8x128xbf16>
    %c0_21 = arith.constant 0 : index
    %c0_22 = arith.constant 0 : index
    %42 = vector.load %arg8[%c0_21, %c0_22] : memref<8x128xbf16, #tpu.memory_space<vmem>>, vector<8x128xbf16>
    tpu.vector_store %arg8[%c0_21, %c0_22], %41 {strides = array<i32>} : memref<8x128xbf16, #tpu.memory_space<vmem>>, vector<8x128xbf16>,
    return
  }
  func.func @transform_0(%arg0: i32) -> (i32, i32) {
    %c0_i32 = arith.constant 0 : i32
    %c0_i32_0 = arith.constant 0 : i32
    return %arg0, %c0_i32 : i32, i32
  }
  func.func @transform_1(%arg0: i32) -> (i32, i32) {
    %c0_i32 = arith.constant 0 : i32
    %c0_i32_0 = arith.constant 0 : i32
    %c0_i32_1 = arith.constant 0 : i32
    return %c0_i32, %c0_i32_0 : i32, i32
  }
  func.func @transform_2(%arg0: i32) -> (i32, i32) {
    %c0_i32 = arith.constant 0 : i32
    %c0_i32_0 = arith.constant 0 : i32
    %c0_i32_1 = arith.constant 0 : i32
    return %c0_i32, %c0_i32_0 : i32, i32
  }
  func.func @transform_3(%arg0: i32) -> (i32, i32) {
    %c0_i32 = arith.constant 0 : i32
    %c0_i32_0 = arith.constant 0 : i32
    %c0_i32_1 = arith.constant 0 : i32
    return %c0_i32, %c0_i32_0 : i32, i32
  }
  func.func @transform_4(%arg0: i32) -> (i32, i32) {
    %c0_i32 = arith.constant 0 : i32
    %c0_i32_0 = arith.constant 0 : i32
    %c0_i32_1 = arith.constant 0 : i32
    return %c0_i32, %c0_i32_0 : i32, i32
  }
  func.func @transform_5(%arg0: i32) -> (i32, i32) {
    %c0_i32 = arith.constant 0 : i32
    %c0_i32_0 = arith.constant 0 : i32
    %c0_i32_1 = arith.constant 0 : i32
    return %c0_i32, %c0_i32_0 : i32, i32
  }
  func.func @transform_6(%arg0: i32) -> (i32, i32) {
    %c0_i32 = arith.constant 0 : i32
    %c0_i32_0 = arith.constant 0 : i32
    %c0_i32_1 = arith.constant 0 : i32
    return %c0_i32, %c0_i32_0 : i32, i32
  }
  func.func @transform_7(%arg0: i32) -> (i32, i32) {
    %c0_i32 = arith.constant 0 : i32
    %c0_i32_0 = arith.constant 0 : i32
    return %arg0, %c0_i32 : i32, i32
  }
}

</mosaic_0001>

<bundles_post_ra>
// kernel: sdf_pose_head_forward.1
= control target key start
LH: loop header
LB: loop body
LE: loop exit
PB: predicated region body
PF: predicated region fallthrough
CT: control target
= control target key end

     0   :  { %vm48_vm0 = vcmask 261120   ;;  %v231_v31 = vlaneseq  ;;  %s472_s1 = inlined_call_operand.vmem [shape: bf16[32,128], index: 1, kind: input, shape index: {}]   ;;  %s473_s3 = inlined_call_operand.vmem [shape: bf16[128,128], index: 3, kind: input, shape index: {}]   ;;  %s474_s2 = inlined_call_operand.vmem [shape: f32[1,128], index: 2, kind: input, shape index: {}]   ;;  %s475_s0 = inlined_call_operand.vmem [shape: bf16[8,32], index: 0, kind: input, shape index: {}]   ;;  %s476_s4 = inlined_call_operand.vmem [shape: f32[1,128], index: 4, kind: input, shape index: {}]   ;;  %s477_s5 = inlined_call_operand.vmem [shape: bf16[128,128], index: 5, kind: input, shape index: {}]   ;;  %s478_s6 = inlined_call_operand.vmem [shape: f32[1,128], index: 6, kind: input, shape index: {}]   ;;  %s479_s7 = inlined_call_operand.vmem [shape: bf16[8,128], index: 7, kind: output, shape index: {}]  }
   0x1   :  { %v333_v0 = vld [vmem:[%s472_s1 + $0x8] sm:$0xff]  ;;  %v341_v1 = vld [vmem:[%s473_s3 + $0x38] sm:$0xff]  ;;  %v332_v2 = vld [vmem:[%s472_s1] sm:$0xff] }
   0x2   :  { %58 = vmatpush.bf16.msra.mxu0 %v333_v0  ;;  %135 = vmatpush.bf16.msra.mxu1 %v341_v1  ;;  %v340_v3 = vld [vmem:[%s473_s3 + $0x30] sm:$0xff]  ;;  %v27_v4 = vld [vmem:[%s475_s0] sm:$0xf]  ;;  %v339_v5 = vld [vmem:[%s473_s3 + $0x28] sm:$0xff]  ;;  %v232_v32 = vand.u32 127, %v231_v31 }
   0x3   :  { %v338_v6 = vld [vmem:[%s473_s3 + $0x20] sm:$0xff]  ;;  %v337_v7 = vld [vmem:[%s473_s3 + $0x18] sm:$0xff]  ;;  %v336_v8 = vld [vmem:[%s473_s3 + $0x10] sm:$0xff] }
   0x4   :  { %v335_v9 = vld [vmem:[%s473_s3 + $0x8] sm:$0xff]  ;;  %v334_v10 = vld [vmem:[%s473_s3] sm:$0xff]  ;;  %v349_v11 = vld [vmem:[%s477_s5 + $0x38] sm:$0xff]  ;;  %vm233_vm1 = vcmp.ge.s32.totalorder %v232_v32, 12  ;;  %vm234_vm2 = vcmp.lt.s32.totalorder %v232_v32, 16 }
   0x5   :  { %218 = vmatpush.bf16.msra.mxu2 %v349_v11  ;;  %v348_v12 = vld [vmem:[%s477_s5 + $0x30] sm:$0xff]  ;;  %v347_v13 = vld [vmem:[%s477_s5 + $0x28] sm:$0xff]  ;;  %v346_v14 = vld [vmem:[%s477_s5 + $0x20] sm:$0xff] }
   0x6   :  { %59 = vmatpush.bf16.msra.mxu0 %v332_v2  ;;  %136 = vmatpush.bf16.msra.mxu1 %v340_v3  ;;  %v345_v15 = vld [vmem:[%s477_s5 + $0x18] sm:$0xff]  ;;  %v344_v16 = vld [vmem:[%s477_s5 + $0x10] sm:$0xff]  ;;  %v350_v17 = vld [vmem:[%s474_s2] ss:$0 sm:$0xff] }
   0x7   :  { %v343_v23 = vld [vmem:[%s477_s5 + $0x8] sm:$0xff]  ;;  %v342_v24 = vld [vmem:[%s477_s5] sm:$0xff]  ;;  %vm461_vm3 = vmand %vm233_vm1, %vm234_vm2 }
   0x8   :  { %v351_v25 = vld [vmem:[%s476_s4] ss:$0 sm:$0xff] }
   0x9   :  { %267 = vmatmul.msk.bf16.vlgmr.msra.gmra.mxu0 %vm48_vm0, %v27_v4  ;;  %219 = vmatpush.bf16.msra.mxu2 %v348_v12  ;;  %v352_v33 = vld [vmem:[%s478_s6] ss:$0 sm:$0xff] }
   0xa   :  { %137 = vmatpush.bf16.msra.mxu1 %v339_v5 }
   0xd   :  { %220 = vmatpush.bf16.msra.mxu2 %v347_v13 }
   0xe   :  { %138 = vmatpush.bf16.msra.mxu1 %v338_v6 }
  0x11   :  { %221 = vmatpush.bf16.msra.mxu2 %v346_v14 }
  0x12   :  { %139 = vmatpush.bf16.msra.mxu1 %v337_v7 }
  0x15   :  { %222 = vmatpush.bf16.msra.mxu2 %v345_v15 }
  0x16   :  { %140 = vmatpush.bf16.msra.mxu1 %v336_v8 }
  0x19   :  { %223 = vmatpush.bf16.msra.mxu2 %v344_v16 }
  0x1a   :  { %141 = vmatpush.bf16.msra.mxu1 %v335_v9 }
  0x1d   :  { %224 = vmatpush.bf16.msra.mxu2 %v343_v23 }
  0x1e   :  { %142 = vmatpush.bf16.msra.mxu1 %v334_v10 }
  0x21   :  { %225 = vmatpush.bf16.msra.mxu2 %v342_v24 }
  0x86   :  { %v61_v18 = vpop.f32.mrf.mxu0 }
  0x87   :  { %v62_v19 = vadd.f32 %v350_v17, %v61_v18 }
  0x89   :  { %v65_v20 = vmax.f32 %v62_v19, 0.0 }
  0x8b   :  { %v66_v21 = vpack.c.bf16 %v65_v20, %v65_v20 }
  0x8d   :  { %143 = vmatmul.bf16.vlgmr.msra.gmra.mxu1 %v66_v21 }
  0x8e   :  { %v63_v22 = vpop.f32.mrf.mxu0 }
 0x10a   :  { %v144_v26 = vpop.f32.mrf.mxu1 }
 0x10b   :  { %v145_v27 = vadd.f32 %v351_v25, %v144_v26 }
 0x10d   :  { %v148_v28 = vmax.f32 %v145_v27, 0.0 }
 0x10f   :  { %v149_v29 = vpack.c.bf16 %v148_v28, %v148_v28 }
 0x111   :  { %226 = vmatmul.bf16.vlgmr.msra.gmra.mxu2 %v149_v29 }
 0x112   :  { %v146_v30 = vpop.f32.mrf.mxu1 }
 0x194   :  { %v227_v34 = vpop.f32.mrf.mxu2 }
 0x195   :  { %v228_v36 = vadd.f32 %v352_v33, %v227_v34 }
 0x197   :  { %v236_v37 = vsel %vm461_vm3, %v228_v36, 0.0 }
 0x198   :  { %v237_v38 = vmul.f32 %v236_v37, %v236_v37 }
 0x19a   :  { %238 = vadd.xlane.f32.xlu0 %v237_v38 }
 0x19c   :  { %v229_v39 = vpop.f32.mrf.mxu2 }
 0x20d   :  { %v239_v40 = vpop.xlane.xlu0 %238 }
 0x20e   :  { %v240_v41 = vadd.f32 1e-12, %v239_v40 }
 0x210   :  { %353 = vrsqrt.f32 %v240_v41  ;;  %vm247_vm5 = vweird.f32 %v240_v41 }
 0x216   :  { %v354_v42 = vpop.eup %353 }
 0x217   :  { %v242_v43 = vmul.f32 %v354_v42, %v240_v41  ;;  %vm248_vm4 = vweird.f32 %v354_v42 }
 0x218   :  { %vm249_vm6 = vmor %vm247_vm5, %vm248_vm4 }
 0x219   :  { %v243_v44 = vmul.f32 %v354_v42, %v242_v43 }
 0x21b   :  { %v244_v45 = vmul.f32 0.5, %v243_v44 }
 0x21d   :  { %v245_v46 = vsub.f32 1.5, %v244_v45 }
 0x21f   :  { %v246_v47 = vmul.f32 %v354_v42, %v245_v46 }
 0x221   :  { %v250_v48 = vsel %vm249_vm6, %v354_v42, %v246_v47 }
 0x222   :  { %v251_v49 = vsel %vm461_vm3, %v250_v48, 1.0 }
 0x223   :  { %v252_v50 = vmul.f32 %v251_v49, %v228_v36 }
 0x225   :  { %v253_v51 = vpack.c.bf16 %v252_v50, %v252_v50 }
 0x227   :  { %254 = vst [vmem:[%s479_s7] sm:$0xf] %v253_v51 }

</bundles_post_ra>
